<compile_context>
chip_gen: v7x
topology: tpu7x:2x2x1
jax: 0.10.0
libtpu: 0.0.40
codegen_flags: <defaults>
</compile_context>

<pallas_src>
import functools
import math

import jax
import jax.numpy as jnp
import numpy as np
from jax.experimental import pallas as pl
from jax.experimental.pallas import tpu as pltpu


def _round_up(x, m):
    return ((x + m - 1) // m) * m


def _cdiv(a, b):
    return (a + b - 1) // b


_VMEM_LIMIT = 32 * 1024 * 1024  # safe on v5e/v6e/v7x; tiles stay well below


# ------------------------------------------------------------------
# Kernel 1: sum(log(x)) over one 2-D slab (rows, lane)
# ------------------------------------------------------------------
def _sum_log_kernel(rows, mask_from, x_ref, o_ref, acc_ref):
    p = pl.program_id(0)
    k = pl.program_id(1)
    gk = p * pl.num_programs(1) + k            # global (unclamped) row-block index

    row_tile, lane = x_ref.shape
    acc_rows = acc_ref.shape[0]

    @pl.when(k == 0)
    def _():
        acc_ref[...] = jnp.zeros_like(acc_ref)

    x = x_ref[...].astype(jnp.float32)

    def accum(xv):
        xl = jnp.log(xv)
        if acc_rows != row_tile:
            # grouped sublane fold: pure VALU adds (no per-step XLU reduce)
            xl = jnp.sum(xl.reshape(row_tile // acc_rows, acc_rows, lane), axis=0)
        acc_ref[...] += xl

    @pl.when(gk < mask_from)                   # interior block: no masking needed
    def _():
        accum(x)

    @pl.when(gk >= mask_from)                  # ragged boundary / clamped duplicate
    def _():
        row = gk * row_tile + jax.lax.broadcasted_iota(jnp.int32, (row_tile, 1), 0)
        accum(jnp.where(row < rows, x, 1.0))   # mask BEFORE log; log(1) = 0

    @pl.when(k == pl.num_programs(1) - 1)
    def _():
        o_ref[...] = jnp.sum(acc_ref[...], axis=0, keepdims=True)


def _sum_log_2d(slab, *, row_tile_cap=2048):
    """sum(log(slab)) for a 2-D (rows, lane) array via one pallas_call."""
    rows, lane = slab.shape
    row_tile = row_tile_cap if rows > row_tile_cap else rows
    rb_total = _cdiv(rows, row_tile)
    p_blocks = 2 if rb_total >= 2 else 1       # keep both v7x TensorCores busy
    kb_per_p = _cdiv(rb_total, p_blocks)
    acc_rows = 8 if (row_tile % 8 == 0) else row_tile
    # First block index that needs row masking (ragged last block; clamped dups).
    mask_from = rb_total - 1 if (rows % row_tile) != 0 else rb_total

    partial = pl.pallas_call(
        functools.partial(_sum_log_kernel, rows, mask_from),
        out_shape=jax.ShapeDtypeStruct((1, p_blocks * lane), jnp.float32),
        grid=(p_blocks, kb_per_p),             # reduction axis last
        in_specs=[pl.BlockSpec(
            (row_tile, lane),
            lambda p, k: (jnp.minimum(p * kb_per_p + k, rb_total - 1), 0))],
        out_specs=pl.BlockSpec((1, lane), lambda p, k: (0, p)),
        scratch_shapes=[pltpu.VMEM((acc_rows, lane), jnp.float32)],
        compiler_params=pltpu.CompilerParams(
            dimension_semantics=("parallel", "arbitrary"),
            vmem_limit_bytes=_VMEM_LIMIT),
    )(slab)
    return jnp.sum(partial)                    # tiny final lane fold in glue


def sum_log_tensor(x):
    """sum(log(x)) over all elements of one tensor, with copy-free reshapes
    whenever numel is a multiple of 128 (inputs stay in producer dtype)."""
    flat = jnp.reshape(x, (-1,))
    n = flat.shape[0]
    for lane in (512, 256, 128):
        if n % lane == 0:
            return _sum_log_2d(jnp.reshape(flat, (n // lane, lane)))
    if n < 128:
        # tiny tensor: single full-array block, no padding / no copy
        return _sum_log_2d(jnp.reshape(flat, (1, n)))
    # TODO(synk): numel not a multiple of 128 (rare for conv feature maps):
    # pad just this one tensor with 1.0 (log(1)=0); one extra copy of it only.
    pad = _round_up(n, 128) - n
    flat = jnp.pad(flat, (0, pad), constant_values=1.0)
    return _sum_log_2d(jnp.reshape(flat, (-1, 128)))


def sum_log_all(likelihoods):
    """Total sum(log(x)) over every likelihood tensor (one small call each)."""
    return sum(sum_log_tensor(l) for l in likelihoods)


# ------------------------------------------------------------------
# Kernel 2: per-sample MSE  mean((x_hat - target)^2, dim=(1,2,3))
# ------------------------------------------------------------------
def _per_sample_mse_kernel(feat, mask_from, xh_ref, tg_ref, o_ref, acc_ref):
    p = pl.program_id(0)
    k = pl.program_id(2)
    gk = p * pl.num_programs(2) + k            # global (unclamped) feature block

    n_tile, f_tile = xh_ref.shape

    @pl.when(k == 0)
    def _():
        acc_ref[...] = jnp.zeros_like(acc_ref)

    xh = xh_ref[...].astype(jnp.float32)
    tg = tg_ref[...].astype(jnp.float32)

    @pl.when(gk < mask_from)                   # interior block
    def _():
        d = xh - tg
        acc_ref[...] += jnp.sum(d * d, axis=1, keepdims=True)

    @pl.when(gk >= mask_from)                  # ragged boundary / clamped duplicate
    def _():
        col = gk * f_tile + jax.lax.broadcasted_iota(jnp.int32, (1, f_tile), 1)
        d = jnp.where(col < feat, xh - tg, 0.0)   # mask BEFORE squaring
        acc_ref[...] += jnp.sum(d * d, axis=1, keepdims=True)

    @pl.when(k == pl.num_programs(2) - 1)
    def _():
        # lane-dense store: broadcast the per-sample sum across 128 lanes
        o_ref[...] = jnp.broadcast_to(acc_ref[...].reshape(1, n_tile, 1),
                                      o_ref.shape)


def per_sample_mse(x_hat, target, *, f_tile_cap=32768):
    """Returns (N,) vector: mean squared error per sample over (C,H,W)."""
    N = target.shape[0]
    feat = int(np.prod(target.shape[1:]))
    xh2 = jnp.reshape(x_hat, (N, feat))        # free reshapes; keep producer dtype
    tg2 = jnp.reshape(target, (N, feat))

    # Batch tiling: multiple of 8 that divides N, or the full batch.
    if N % 16 == 0:
        n_tile = 16
    elif N % 8 == 0:
        n_tile = 8
    else:
        n_tile = N
    n_blocks = N // n_tile

    # Lane-dense feature tile; NO glue-level padding (ragged tail masked in-kernel).
    f_tile = min(f_tile_cap, _round_up(feat, 128))
    kb_total = _cdiv(feat, f_tile)
    # 2-way feature split keeps the second v7x TensorCore busy when the batch
    # axis alone gives only one parallel block.
    p_blocks = 2 if (n_blocks == 1 and kb_total >= 2) else 1
    kb_per_p = _cdiv(kb_total, p_blocks)
    mask_from = kb_total - 1 if (feat % f_tile) != 0 else kb_total

    in_map = lambda p, i, k: (i, jnp.minimum(p * kb_per_p + k, kb_total - 1))

    partials = pl.pallas_call(
        functools.partial(_per_sample_mse_kernel, feat, mask_from),
        out_shape=jax.ShapeDtypeStruct((p_blocks, N, 128), jnp.float32),
        grid=(p_blocks, n_blocks, kb_per_p),   # reduction axis last
        in_specs=[pl.BlockSpec((n_tile, f_tile), in_map),
                  pl.BlockSpec((n_tile, f_tile), in_map)],
        out_specs=pl.BlockSpec((1, n_tile, 128), lambda p, i, k: (p, i, 0)),
        scratch_shapes=[pltpu.VMEM((n_tile, 1), jnp.float32)],
        compiler_params=pltpu.CompilerParams(
            dimension_semantics=("parallel", "parallel", "arbitrary"),
            vmem_limit_bytes=_VMEM_LIMIT),
    )(xh2, tg2)
    # every lane holds the same per-sample partial sum -> take lane 0
    return partials[:, :, 0].sum(axis=0) / feat


# ------------------------------------------------------------------
# RateDistortionLoss.forward equivalent
# ------------------------------------------------------------------
def rate_distortion_loss(output, target, lmbda):
    N, _, H, W = target.shape
    num_pixels = N * H * W

    # bpp_loss = sum_k sum(log(likelihoods_k)) / (-ln(2) * num_pixels)
    total_log = sum_log_all(list(output["likelihoods"].values()))
    bpp_loss = total_log / (-math.log(2) * num_pixels)

    # per-sample MSE over (C, H, W)
    mse_ps = per_sample_mse(output["x_hat"], target)  # (N,)

    dloss = (255.0 ** 2) * jnp.mean(jnp.multiply(lmbda, mse_ps))
    mse_loss = jnp.mean(mse_ps)
    loss = dloss + bpp_loss
    psnr_loss = -10.0 * jnp.log10(mse_loss)

    return {
        "bpp_loss": bpp_loss,
        "mse_loss": mse_loss,
        "loss": loss,
        "psnr_loss": psnr_loss,
    }


# ------------------------------------------------------------------
# Pure-JAX reference (sanity check only)
# ------------------------------------------------------------------
def rate_distortion_loss_ref(output, target, lmbda):
    N, _, H, W = target.shape
    num_pixels = N * H * W
    bpp = sum(
        jnp.sum(jnp.log(v.astype(jnp.float32))) / (-math.log(2) * num_pixels)
        for v in output["likelihoods"].values()
    )
    mse_ps = jnp.mean(
        (output["x_hat"].astype(jnp.float32) - target.astype(jnp.float32)) ** 2,
        axis=(1, 2, 3),
    )
    dloss = 255.0 ** 2 * jnp.mean(lmbda * mse_ps)
    mse = jnp.mean(mse_ps)
    return {
        "bpp_loss": bpp,
        "mse_loss": mse,
        "loss": dloss + bpp,
        "psnr_loss": -10.0 * jnp.log10(mse),
    }


if __name__ == "__main__":
    key = jax.random.PRNGKey(0)
    k1, k2, k3, k4 = jax.random.split(key, 4)

    # Small, deterministic synthetic inputs (NCHW, as in PyTorch).
    N, C, H, W = 2, 3, 16, 16
    target = jax.random.uniform(k1, (N, C, H, W), dtype=jnp.float32)
    x_hat = jnp.clip(
        target + 0.05 * jax.random.normal(k2, (N, C, H, W), dtype=jnp.float32),
        0.0,
        1.0,
    )
    # Likelihoods (strictly positive, in (0, 1]) for two latent tensors.
    lik_y = jax.random.uniform(
        k3, (N, 8, H // 4, W // 4), dtype=jnp.float32, minval=0.01, maxval=1.0
    )
    lik_z = jax.random.uniform(
        k4, (N, 8, H // 8, W // 8), dtype=jnp.float32, minval=0.01, maxval=1.0
    )
    # Per-sample Lagrangian multipliers (variable-bitrate training style).
    lmbda = jnp.array([0.0035, 0.0067], dtype=jnp.float32)

    output = {"x_hat": x_hat, "likelihoods": {"y": lik_y, "z": lik_z}}

    out = rate_distortion_loss(output, target, lmbda)
    out = jax.tree_util.tree_map(jax.block_until_ready, out)

    ref = rate_distortion_loss_ref(output, target, lmbda)
    for k in ("bpp_loss", "mse_loss", "loss", "psnr_loss"):
        np.testing.assert_allclose(
            np.asarray(out[k]), np.asarray(ref[k]), rtol=1e-4, atol=1e-5
        )

    print("KERNEL_OK")
</pallas_src>

<mosaic_0001>
module attributes {stable_mosaic.version = 11 : i64} {
  func.func @_sum_log_kernel(%arg0: i32, %arg1: i32, %arg2: memref<1x256xf32, #tpu.memory_space<vmem>>, %arg3: memref<1x256xf32, #tpu.memory_space<vmem>>, %arg4: memref<1x256xf32, #tpu.memory_space<vmem>>) attributes {dimension_semantics = [#tpu.dimension_semantics<parallel>, #tpu.dimension_semantics<arbitrary>], iteration_bounds = array<i64: 1, 1>, scalar_prefetch = 0 : i64, scratch_operands = 1 : i64, tpu.core_type = #tpu.core_type<tc>, window_params = [{transform_indices = @transform_0, window_bounds = array<i64: 1, 256>}, {transform_indices = @transform_1, window_bounds = array<i64: 1, 256>}]} {
    %c1_i32 = arith.constant 1 : i32
    %0 = arith.muli %arg0, %c1_i32 : i32
    %1 = arith.addi %0, %arg1 : i32
    %c0_i32 = arith.constant 0 : i32
    %2 = arith.cmpi eq, %arg1, %c0_i32 : i32
    %3 = arith.extui %2 : i1 to i32
    %c0_i32_0 = arith.constant 0 : i32
    %4 = arith.cmpi ne, %3, %c0_i32_0 : i32
    scf.if %4 {
      %cst = arith.constant 0.000000e+00 : f32
      %15 = vector.broadcast %cst : f32 to vector<1x256xf32>
      %c0_8 = arith.constant 0 : index
      %c0_9 = arith.constant 0 : index
      %16 = vector.load %arg4[%c0_8, %c0_9] : memref<1x256xf32, #tpu.memory_space<vmem>>, vector<1x256xf32>
      tpu.vector_store %arg4[%c0_8, %c0_9], %15 {strides = array<i32>} : memref<1x256xf32, #tpu.memory_space<vmem>>, vector<1x256xf32>,
    } else {
    }
    %c0 = arith.constant 0 : index
    %c0_1 = arith.constant 0 : index
    %5 = vector.load %arg2[%c0, %c0_1] : memref<1x256xf32, #tpu.memory_space<vmem>>, vector<1x256xf32>
    %c1_i32_2 = arith.constant 1 : i32
    %6 = arith.cmpi slt, %1, %c1_i32_2 : i32
    %7 = arith.extui %6 : i1 to i32
    %c0_i32_3 = arith.constant 0 : i32
    %8 = arith.cmpi ne, %7, %c0_i32_3 : i32
    scf.if %8 {
      %15 = math.log %5 : vector<1x256xf32>
      %c0_8 = arith.constant 0 : index
      %c0_9 = arith.constant 0 : index
      %16 = vector.load %arg4[%c0_8, %c0_9] : memref<1x256xf32, #tpu.memory_space<vmem>>, vector<1x256xf32>
      %17 = arith.addf %16, %15 : vector<1x256xf32>
      %c0_10 = arith.constant 0 : index
      %c0_11 = arith.constant 0 : index
      %18 = vector.load %arg4[%c0_10, %c0_11] : memref<1x256xf32, #tpu.memory_space<vmem>>, vector<1x256xf32>
      tpu.vector_store %arg4[%c0_10, %c0_11], %17 {strides = array<i32>} : memref<1x256xf32, #tpu.memory_space<vmem>>, vector<1x256xf32>,
    } else {
    }
    %c1_i32_4 = arith.constant 1 : i32
    %9 = arith.cmpi sge, %1, %c1_i32_4 : i32
    %10 = arith.extui %9 : i1 to i32
    %c0_i32_5 = arith.constant 0 : i32
    %11 = arith.cmpi ne, %10, %c0_i32_5 : i32
    scf.if %11 {
      %c1_i32_8 = arith.constant 1 : i32
      %15 = arith.muli %1, %c1_i32_8 : i32
      %16 = tpu.iota {dimensions = array<i32: 0>} : vector<1x1xi32>
      %17 = vector.broadcast %15 : i32 to vector<1x1xi32>
      %18 = arith.addi %17, %16 : vector<1x1xi32>
      %c1_i32_9 = arith.constant 1 : i32
      %19 = vector.broadcast %c1_i32_9 : i32 to vector<1x1xi32>
      %20 = arith.cmpi slt, %18, %19 : vector<1x1xi32>
      %cst = arith.constant 1.000000e+00 : f32
      %21 = vector.shape_cast %20 : vector<1x1xi1> to vector<1x1xi1>
      %22 = vector.broadcast %21 : vector<1x1xi1> to vector<1x256xi1>
      %23 = vector.broadcast %cst : f32 to vector<1x256xf32>
      %24 = arith.select %22, %5, %23 : vector<1x256xi1>, vector<1x256xf32>
      %25 = math.log %24 : vector<1x256xf32>
      %c0_10 = arith.constant 0 : index
      %c0_11 = arith.constant 0 : index
      %26 = vector.load %arg4[%c0_10, %c0_11] : memref<1x256xf32, #tpu.memory_space<vmem>>, vector<1x256xf32>
      %27 = arith.addf %26, %25 : vector<1x256xf32>
      %c0_12 = arith.constant 0 : index
      %c0_13 = arith.constant 0 : index
      %28 = vector.load %arg4[%c0_12, %c0_13] : memref<1x256xf32, #tpu.memory_space<vmem>>, vector<1x256xf32>
      tpu.vector_store %arg4[%c0_12, %c0_13], %27 {strides = array<i32>} : memref<1x256xf32, #tpu.memory_space<vmem>>, vector<1x256xf32>,
    } else {
    }
    %c0_i32_6 = arith.constant 0 : i32
    %12 = arith.cmpi eq, %arg1, %c0_i32_6 : i32
    %13 = arith.extui %12 : i1 to i32
    %c0_i32_7 = arith.constant 0 : i32
    %14 = arith.cmpi ne, %13, %c0_i32_7 : i32
    scf.if %14 {
      %c0_8 = arith.constant 0 : index
      %c0_9 = arith.constant 0 : index
      %15 = vector.load %arg4[%c0_8, %c0_9] : memref<1x256xf32, #tpu.memory_space<vmem>>, vector<1x256xf32>
      %cst = arith.constant dense<0.000000e+00> : vector<256xf32>
      %16 = vector.multi_reduction <add>, %15, %cst [0] : vector<1x256xf32> to vector<256xf32>
      %17 = vector.shape_cast %16 : vector<256xf32> to vector<1x256xf32>
      %c0_10 = arith.constant 0 : index
      %c0_11 = arith.constant 0 : index
      %18 = vector.load %arg3[%c0_10, %c0_11] : memref<1x256xf32, #tpu.memory_space<vmem>>, vector<1x256xf32>
      tpu.vector_store %arg3[%c0_10, %c0_11], %17 {strides = array<i32>} : memref<1x256xf32, #tpu.memory_space<vmem>>, vector<1x256xf32>,
    } else {
    }
    return
  }
  func.func @transform_0(%arg0: i32, %arg1: i32) -> (i32, i32) {
    %c1_i32 = arith.constant 1 : i32
    %0 = arith.muli %arg0, %c1_i32 : i32
    %1 = arith.addi %0, %arg1 : i32
    %c0_i32 = arith.constant 0 : i32
    %2 = arith.minsi %1, %c0_i32 : i32
    %c0_i32_0 = arith.constant 0 : i32
    %c0_i32_1 = arith.constant 0 : i32
    return %2, %c0_i32_0 : i32, i32
  }
  func.func @transform_1(%arg0: i32, %arg1: i32) -> (i32, i32) {
    %c0_i32 = arith.constant 0 : i32
    %c0_i32_0 = arith.constant 0 : i32
    return %c0_i32, %arg0 : i32, i32
  }
}

</mosaic_0001>

<bundles_post_ra>
// kernel: tpu_custom_call.1
= control target key start
LH: loop header
LB: loop body
LE: loop exit
PB: predicated region body
PF: predicated region fallthrough
CT: control target
= control target key end

     0   :  { %6 = vsyncpa [#allocation4], 0  ;;  %s224_s0 = inlined_call_operand.hbm [shape: f32[1,256], index: 0, kind: input, shape index: {}]   ;;  %s225_s1 = inlined_call_operand.hbm [shape: f32[1,256], index: 1, kind: output, shape index: {}]  }
   0x1   :  { %7 = vsyncpa [#allocation5], 0  ;;  %s187_s6 = smov [#allocation3]   ;;  %s139_s10 = scalar_lea.hbm %s224_s0, 32 }
   0x2   :  { %s20_s7 = sshll.u32 %s187_s6, 4  ;;  %p140_p0 = scmp.ne.s32.totalorder %s224_s0, %s139_s10  ;;  %s21_s7 = int_to_ptr.vmem [resolvable:$true] %s20_s7 }
   0x3   :  { %p143_p1 = scmp.lt.u32.totalorder %s139_s10, %s224_s0 }
   0x5   :  { %p145_p2 = pnand %p143_p1, %p140_p0 }
   0x7   :  { %148 = shalt.err (!%p145_p2)
}
   0x8   :  { %s149_s15 = scalar_lea.vmem %s21_s7, 32  ;;  %p154_p4 = scmp.lt.s32.totalorder %s21_s7, %s21_s7 }
   0x9   :  { %p150_p3 = scmp.ne.s32.totalorder %s21_s7, %s149_s15  ;;  %p155_p5 = scmp.lt.s32.totalorder %s149_s15, %s149_s15 }
   0xb   :  { %p156_p6 = por %p155_p5, %p154_p4 }
   0xd   :  { %p157_p7 = pnand %p156_p6, %p150_p3 }
   0xf   :  { %160 = shalt.err (!%p157_p7)
}
  0x10   :  { %23 = dma.hbm_to_vmem [thread:$0]  %s224_s0, 32, %s21_s7, [#allocation4]  }
  0x11   :  { %183 = dma.done.wait [#allocation4], 32  }
  0x12   :  { %184 = vsyncadd [#allocation4], 4294967264  ;;  %v35_v0 = vlaneseq  ;;  %v188_v1 = vmov 0.0   ;;  %v40_v2 = vld [vmem:[#allocation3] sm:$0x3]  ;;  %s189_s18 = smov [#allocation6]  }
  0x13   :  { %137 = vlog2.f32 %v40_v2  ;;  %s123_s19 = sshll.u32 %s189_s18, 4  ;;  %s124_s19 = int_to_ptr.vmem [resolvable:$true] %s123_s19 }
  0x14   :  { %vm37_vm0 = vcmp.lt.s32.totalorder %v35_v0, 256  ;;  %s161_s20 = scalar_lea.vmem %s124_s19, 32  ;;  %p166_p9 = scmp.lt.s32.totalorder %s124_s19, %s124_s19 }
  0x15   :  { %39 = vst.msk [vmem:[#allocation2] sm:$0x3] %vm37_vm0, %v188_v1  ;;  %p162_p8 = scmp.ne.s32.totalorder %s124_s19, %s161_s20  ;;  %p167_p10 = scmp.lt.s32.totalorder %s161_s20, %s161_s20 }
  0x17   :  { %p168_p11 = por %p167_p10, %p166_p9 }
  0x19   :  { %p169_p12 = pnand %p168_p11, %p162_p8 }
  0x1c   :  { %v47_v4 = vld [vmem:[#allocation2] sm:$0x3] }
  0x1d   :  { %v138_v3 = vpop.eup %137 }
  0x1e   :  { %v46_v5 = vmul.f32 0.6931472, %v138_v3 }
  0x20   :  { %v48_v6 = vadd.f32 %v47_v4, %v46_v5 }
  0x22   :  { %53 = vst.msk [vmem:[#allocation2] sm:$0x3] %vm37_vm0, %v48_v6 }
  0x29   :  { %v110_v7 = vld [vmem:[#allocation2] sm:$0x3] }
  0x2a   :  { %116 = vst.msk [vmem:[#allocation6] sm:$0x3] %vm37_vm0, %v110_v7 }
  0x2b   :  { %172 = shalt.err (!%p169_p12)
}
  0x2c   :  { %s173_s22 = scalar_lea.hbm %s225_s1, 32 }
  0x2d   :  { %p174_p13 = scmp.ne.s32.totalorder %s225_s1, %s173_s22  ;;  %p177_p0 = scmp.lt.u32.totalorder %s173_s22, %s225_s1 }
  0x2f   :  { %p179_p1 = pnand %p177_p0, %p174_p13 }
  0x31   :  { %182 = shalt.err (!%p179_p1)
}
  0x32   :  { %126 = dma.vmem_to_hbm [thread:$0]  %s124_s19, 32, %s225_s1, [#allocation5]  }
  0x33   :  { %185 = dma.done.wait [#allocation5], 32  }
  0x34   :  { %186 = vsyncadd [#allocation5], 4294967264 }
  0x35   :  { %130 = vsyncpa [#allocation4], 1 }
  0x36   :  { %131 = vsyncpa [#allocation5], 1 }

</bundles_post_ra>
